<compile_context>
chip_gen: v7x
topology: tpu7x:2x2x1
jax: 0.10.0
libtpu: 0.0.40
codegen_flags: <defaults>
</compile_context>

<pallas_src>
import math

import jax
import jax.numpy as jnp
from jax.experimental import pallas as pl
from jax.experimental.pallas import tpu as pltpu

LAMBDA = 0.01                    # sparsity_threshold
_MAX_TILE_ELEMS = 256 * 1024     # 1 MiB of f32 per streamed tile buffer


def _softshrink(v, lam):
    return jnp.where(v > lam, v - lam, jnp.where(v < -lam, v + lam, 0.0))


def fremlp_kernel(xr_ref, xi_ref, c_ref, or_ref, oi_ref):
    xr = xr_ref[...]             # (tm, L) real plane
    xi = xi_ref[...]             # (tm, L) imag plane
    rd = c_ref[0:1, :]           # (1, L)  diag(r) tiled to lane width
    idg = c_ref[1:2, :]          # (1, L)  diag(i)
    rb = c_ref[2:3, :]           # (1, L)  real bias
    ib = c_ref[3:4, :]           # (1, L)  imag bias

    o_real = jnp.maximum(xr * rd - xi * idg + rb, 0.0)
    o_imag = jnp.maximum(xi * rd + xr * idg + ib, 0.0)

    or_ref[...] = _softshrink(o_real, LAMBDA)
    oi_ref[...] = _softshrink(o_imag, LAMBDA)


def fremlp_forward(B, nd, dimension, x_complex, r, i, rb, ib, embed_size):
    """Pallas implementation of FreMLP.forward.

    x_complex: complex64 [B, nd, dimension//2 + 1, embed_size]
    r, i:      float32   [embed_size, embed_size]   (only the diagonal is used,
                                                     matching the einsum)
    rb, ib:    float32   [embed_size]
    returns complex64 [B, nd, dimension//2 + 1, embed_size]
    """
    Fq = dimension // 2 + 1
    D = embed_size
    M = B * nd * Fq
    total = M * D

    # Lane-dense layout: flatten and re-block as [rows, L] where L is a
    # multiple of both 128 (full-lane stores) and D (so the per-feature
    # coefficient pattern tiles exactly across the lane axis).
    L = D * 128 // math.gcd(D, 128)          # lcm(D, 128)
    rows = pl.cdiv(total, L)
    padded = rows * L

    xr = jnp.real(x_complex).astype(jnp.float32).reshape(-1)
    xi = jnp.imag(x_complex).astype(jnp.float32).reshape(-1)
    if padded != total:                      # rare fallback; not hit in demo
        xr = jnp.pad(xr, (0, padded - total))
        xi = jnp.pad(xi, (0, padded - total))
    xr = xr.reshape(rows, L)
    xi = xi.reshape(rows, L)

    reps = L // D
    coeffs = jnp.stack([
        jnp.tile(jnp.diagonal(r).astype(jnp.float32), reps),
        jnp.tile(jnp.diagonal(i).astype(jnp.float32), reps),
        jnp.tile(rb.astype(jnp.float32), reps),
        jnp.tile(ib.astype(jnp.float32), reps),
    ])                                       # (4, L)

    # Row tile: largest multiple of 8 whose f32 tile stays under the budget;
    # small inputs use a single full block (block == full array dims).
    budget_rows = max(8, (_MAX_TILE_ELEMS // L) // 8 * 8)
    tm = rows if rows <= budget_rows else budget_rows
    grid = (pl.cdiv(rows, tm),)

    row_spec = pl.BlockSpec((tm, L), lambda m: (m, 0))
    coef_spec = pl.BlockSpec((4, L), lambda m: (0, 0))

    out_real, out_imag = pl.pallas_call(
        fremlp_kernel,
        out_shape=(jax.ShapeDtypeStruct((rows, L), jnp.float32),
                   jax.ShapeDtypeStruct((rows, L), jnp.float32)),
        grid_spec=pltpu.PrefetchScalarGridSpec(
            num_scalar_prefetch=0,
            grid=grid,
            in_specs=[row_spec, row_spec, coef_spec],
            out_specs=[row_spec, row_spec],
        ),
        compiler_params=pltpu.CompilerParams(
            dimension_semantics=("parallel",)),
    )(xr, xi, coeffs)

    out_real = out_real.reshape(-1)[:total].reshape(B, nd, Fq, D)
    out_imag = out_imag.reshape(-1)[:total].reshape(B, nd, Fq, D)
    return jax.lax.complex(out_real, out_imag)


def fremlp_reference(x_complex, r, i, rb, ib):
    """Pure-JAX reference mirroring the PyTorch code (for verification)."""
    xr = jnp.real(x_complex)
    xi = jnp.imag(x_complex)
    rd = jnp.diagonal(r)
    idg = jnp.diagonal(i)
    o_real = jax.nn.relu(xr * rd - xi * idg + rb)
    o_imag = jax.nn.relu(xi * rd + xr * idg + ib)
    o_real = _softshrink(o_real, LAMBDA)
    o_imag = _softshrink(o_imag, LAMBDA)
    return jax.lax.complex(o_real, o_imag)


if __name__ == "__main__":
    B, nd, dimension, embed_size = 2, 4, 16, 32
    Fq = dimension // 2 + 1

    key = jax.random.PRNGKey(0)
    k1, k2, k3, k4, k5, k6 = jax.random.split(key, 6)

    x_real = jax.random.normal(k1, (B, nd, Fq, embed_size), jnp.float32)
    x_imag = jax.random.normal(k2, (B, nd, Fq, embed_size), jnp.float32)
    x = jax.lax.complex(x_real, x_imag)

    scale = 1.0 / embed_size
    r = scale * jax.random.normal(k3, (embed_size, embed_size), jnp.float32)
    i = scale * jax.random.normal(k4, (embed_size, embed_size), jnp.float32)
    rb = scale * jax.random.normal(k5, (embed_size,), jnp.float32)
    ib = scale * jax.random.normal(k6, (embed_size,), jnp.float32)

    y = fremlp_forward(B, nd, dimension, x, r, i, rb, ib, embed_size)
    y = jax.block_until_ready(y)

    y_ref = fremlp_reference(x, r, i, rb, ib)
    assert y.shape == (B, nd, Fq, embed_size)
    assert jnp.allclose(jnp.real(y), jnp.real(y_ref), atol=1e-5)
    assert jnp.allclose(jnp.imag(y), jnp.imag(y_ref), atol=1e-5)

    print("KERNEL_OK")
</pallas_src>

<mosaic_0001>
module attributes {stable_mosaic.version = 11 : i64} {
  func.func @fremlp_kernel(%arg0: i32, %arg1: memref<18x128xf32, #tpu.memory_space<vmem>>, %arg2: memref<18x128xf32, #tpu.memory_space<vmem>>, %arg3: memref<4x128xf32, #tpu.memory_space<vmem>>, %arg4: memref<18x128xf32, #tpu.memory_space<vmem>>, %arg5: memref<18x128xf32, #tpu.memory_space<vmem>>) attributes {dimension_semantics = [#tpu.dimension_semantics<parallel>], iteration_bounds = array<i64: 1>, scalar_prefetch = 0 : i64, scratch_operands = 0 : i64, tpu.core_type = #tpu.core_type<tc>, window_params = [{transform_indices = @transform_0, window_bounds = array<i64: 18, 128>}, {transform_indices = @transform_1, window_bounds = array<i64: 18, 128>}, {pipeline_mode = #tpu.pipeline_mode<synchronous>, transform_indices = @transform_2, window_bounds = array<i64: 4, 128>}, {transform_indices = @transform_3, window_bounds = array<i64: 18, 128>}, {transform_indices = @transform_4, window_bounds = array<i64: 18, 128>}]} {
    %c0 = arith.constant 0 : index
    %c0_0 = arith.constant 0 : index
    %0 = vector.load %arg1[%c0, %c0_0] : memref<18x128xf32, #tpu.memory_space<vmem>>, vector<18x128xf32>
    %c0_1 = arith.constant 0 : index
    %c0_2 = arith.constant 0 : index
    %1 = vector.load %arg2[%c0_1, %c0_2] : memref<18x128xf32, #tpu.memory_space<vmem>>, vector<18x128xf32>
    %c0_3 = arith.constant 0 : index
    %c0_4 = arith.constant 0 : index
    %2 = vector.load %arg3[%c0_3, %c0_4] : memref<4x128xf32, #tpu.memory_space<vmem>>, vector<1x128xf32>
    %c1 = arith.constant 1 : index
    %c0_5 = arith.constant 0 : index
    %3 = vector.load %arg3[%c1, %c0_5] : memref<4x128xf32, #tpu.memory_space<vmem>>, vector<1x128xf32>
    %c2 = arith.constant 2 : index
    %c0_6 = arith.constant 0 : index
    %4 = vector.load %arg3[%c2, %c0_6] : memref<4x128xf32, #tpu.memory_space<vmem>>, vector<1x128xf32>
    %c3 = arith.constant 3 : index
    %c0_7 = arith.constant 0 : index
    %5 = vector.load %arg3[%c3, %c0_7] : memref<4x128xf32, #tpu.memory_space<vmem>>, vector<1x128xf32>
    %6 = vector.broadcast %2 : vector<1x128xf32> to vector<18x128xf32>
    %7 = arith.mulf %0, %6 : vector<18x128xf32>
    %8 = vector.broadcast %3 : vector<1x128xf32> to vector<18x128xf32>
    %9 = arith.mulf %1, %8 : vector<18x128xf32>
    %10 = arith.subf %7, %9 : vector<18x128xf32>
    %11 = vector.broadcast %4 : vector<1x128xf32> to vector<18x128xf32>
    %12 = arith.addf %10, %11 : vector<18x128xf32>
    %cst = arith.constant 0.000000e+00 : f32
    %13 = vector.broadcast %cst : f32 to vector<18x128xf32>
    %14 = arith.maximumf %12, %13 : vector<18x128xf32>
    %15 = vector.broadcast %2 : vector<1x128xf32> to vector<18x128xf32>
    %16 = arith.mulf %1, %15 : vector<18x128xf32>
    %17 = vector.broadcast %3 : vector<1x128xf32> to vector<18x128xf32>
    %18 = arith.mulf %0, %17 : vector<18x128xf32>
    %19 = arith.addf %16, %18 : vector<18x128xf32>
    %20 = vector.broadcast %5 : vector<1x128xf32> to vector<18x128xf32>
    %21 = arith.addf %19, %20 : vector<18x128xf32>
    %cst_8 = arith.constant 0.000000e+00 : f32
    %22 = vector.broadcast %cst_8 : f32 to vector<18x128xf32>
    %23 = arith.maximumf %21, %22 : vector<18x128xf32>
    %cst_9 = arith.constant 0.00999999977 : f32
    %24 = vector.broadcast %cst_9 : f32 to vector<18x128xf32>
    %25 = arith.cmpf ogt, %14, %24 : vector<18x128xf32>
    %cst_10 = arith.constant 0.00999999977 : f32
    %26 = vector.broadcast %cst_10 : f32 to vector<18x128xf32>
    %27 = arith.subf %14, %26 : vector<18x128xf32>
    %cst_11 = arith.constant -0.00999999977 : f32
    %28 = vector.broadcast %cst_11 : f32 to vector<18x128xf32>
    %29 = arith.cmpf olt, %14, %28 : vector<18x128xf32>
    %cst_12 = arith.constant 0.00999999977 : f32
    %30 = vector.broadcast %cst_12 : f32 to vector<18x128xf32>
    %31 = arith.addf %14, %30 : vector<18x128xf32>
    %cst_13 = arith.constant 0.000000e+00 : f32
    %32 = vector.broadcast %cst_13 : f32 to vector<18x128xf32>
    %33 = arith.select %29, %31, %32 : vector<18x128xi1>, vector<18x128xf32>
    %34 = arith.select %25, %27, %33 : vector<18x128xi1>, vector<18x128xf32>
    %c0_14 = arith.constant 0 : index
    %c0_15 = arith.constant 0 : index
    %35 = vector.load %arg4[%c0_14, %c0_15] : memref<18x128xf32, #tpu.memory_space<vmem>>, vector<18x128xf32>
    tpu.vector_store %arg4[%c0_14, %c0_15], %34 {strides = array<i32>} : memref<18x128xf32, #tpu.memory_space<vmem>>, vector<18x128xf32>,
    %cst_16 = arith.constant 0.00999999977 : f32
    %36 = vector.broadcast %cst_16 : f32 to vector<18x128xf32>
    %37 = arith.cmpf ogt, %23, %36 : vector<18x128xf32>
    %cst_17 = arith.constant 0.00999999977 : f32
    %38 = vector.broadcast %cst_17 : f32 to vector<18x128xf32>
    %39 = arith.subf %23, %38 : vector<18x128xf32>
    %cst_18 = arith.constant -0.00999999977 : f32
    %40 = vector.broadcast %cst_18 : f32 to vector<18x128xf32>
    %41 = arith.cmpf olt, %23, %40 : vector<18x128xf32>
    %cst_19 = arith.constant 0.00999999977 : f32
    %42 = vector.broadcast %cst_19 : f32 to vector<18x128xf32>
    %43 = arith.addf %23, %42 : vector<18x128xf32>
    %cst_20 = arith.constant 0.000000e+00 : f32
    %44 = vector.broadcast %cst_20 : f32 to vector<18x128xf32>
    %45 = arith.select %41, %43, %44 : vector<18x128xi1>, vector<18x128xf32>
    %46 = arith.select %37, %39, %45 : vector<18x128xi1>, vector<18x128xf32>
    %c0_21 = arith.constant 0 : index
    %c0_22 = arith.constant 0 : index
    %47 = vector.load %arg5[%c0_21, %c0_22] : memref<18x128xf32, #tpu.memory_space<vmem>>, vector<18x128xf32>
    tpu.vector_store %arg5[%c0_21, %c0_22], %46 {strides = array<i32>} : memref<18x128xf32, #tpu.memory_space<vmem>>, vector<18x128xf32>,
    return
  }
  func.func @transform_0(%arg0: i32) -> (i32, i32) {
    %c0_i32 = arith.constant 0 : i32
    %c0_i32_0 = arith.constant 0 : i32
    return %arg0, %c0_i32 : i32, i32
  }
  func.func @transform_1(%arg0: i32) -> (i32, i32) {
    %c0_i32 = arith.constant 0 : i32
    %c0_i32_0 = arith.constant 0 : i32
    return %arg0, %c0_i32 : i32, i32
  }
  func.func @transform_2(%arg0: i32) -> (i32, i32) {
    %c0_i32 = arith.constant 0 : i32
    %c0_i32_0 = arith.constant 0 : i32
    %c0_i32_1 = arith.constant 0 : i32
    return %c0_i32, %c0_i32_0 : i32, i32
  }
  func.func @transform_3(%arg0: i32) -> (i32, i32) {
    %c0_i32 = arith.constant 0 : i32
    %c0_i32_0 = arith.constant 0 : i32
    return %arg0, %c0_i32 : i32, i32
  }
  func.func @transform_4(%arg0: i32) -> (i32, i32) {
    %c0_i32 = arith.constant 0 : i32
    %c0_i32_0 = arith.constant 0 : i32
    return %arg0, %c0_i32 : i32, i32
  }
}

</mosaic_0001>

<bundles_post_ra>
// kernel: tpu_custom_call.1
= control target key start
LH: loop header
LB: loop body
LE: loop exit
PB: predicated region body
PF: predicated region fallthrough
CT: control target
= control target key end

     0   :  { %10 = vsyncpa [#allocation3], 0  ;;  %s405_s0 = inlined_call_operand.hbm [shape: f32[18,128], index: 0, kind: input, shape index: {}]   ;;  %s406_s1 = inlined_call_operand.hbm [shape: f32[18,128], index: 1, kind: input, shape index: {}]   ;;  %s407_s2 = inlined_call_operand.vmem [shape: f32[4,128], index: 2, kind: input, shape index: {}]   ;;  %s408_s3 = inlined_call_operand.hbm [shape: f32[18,128], index: 3, kind: output, shape index: {0}]   ;;  %s409_s4 = inlined_call_operand.hbm [shape: f32[18,128], index: 4, kind: output, shape index: {1}]  }
   0x1   :  { %11 = vsyncpa [#allocation6], 0 }
   0x2   :  { %12 = vsyncpa [#allocation4], 0 }
   0x3   :  { %13 = vsyncpa [#allocation9], 0  ;;  %s290_s15 = smov [#allocation2]   ;;  %s194_s19 = scalar_lea.hbm %s405_s0, 384 }
   0x4   :  { %s19_s16 = sshll.u32 %s290_s15, 4  ;;  %p195_p0 = scmp.ne.s32.totalorder %s405_s0, %s194_s19  ;;  %s20_s16 = int_to_ptr.vmem [resolvable:$true] %s19_s16 }
   0x5   :  { %p198_p1 = scmp.lt.u32.totalorder %s194_s19, %s405_s0 }
   0x7   :  { %p200_p2 = pnand %p198_p1, %p195_p0 }
   0x9   :  { %203 = shalt.err (!%p200_p2)
}
   0xa   :  { %s204_s24 = scalar_lea.vmem %s20_s16, 384  ;;  %p209_p4 = scmp.lt.s32.totalorder %s20_s16, %s20_s16 }
   0xb   :  { %p205_p3 = scmp.ne.s32.totalorder %s20_s16, %s204_s24  ;;  %p210_p5 = scmp.lt.s32.totalorder %s204_s24, %s204_s24 }
   0xd   :  { %p211_p6 = por %p210_p5, %p209_p4 }
   0xf   :  { %p212_p7 = pnand %p211_p6, %p205_p3 }
  0x11   :  { %215 = shalt.err (!%p212_p7)
}
  0x12   :  { %s291_s25 = smov 128   ;;  %s292_s26 = smov 8  }
  0x13   :  { %25 = dma.hbm_to_vmem [thread:$0]  %s405_s0, 384, %s20_s16, [#allocation3], %s291_s25, %s291_s25, %s292_s26  }
  0x14   :  { %s293_s29 = smov [#allocation5]   ;;  %s216_s7 = scalar_lea.hbm %s406_s1, 384 }
  0x15   :  { %s31_s30 = sshll.u32 %s293_s29, 4  ;;  %p217_p8 = scmp.ne.s32.totalorder %s406_s1, %s216_s7  ;;  %s32_s30 = int_to_ptr.vmem [resolvable:$true] %s31_s30 }
  0x16   :  { %p220_p9 = scmp.lt.u32.totalorder %s216_s7, %s406_s1 }
  0x18   :  { %p222_p10 = pnand %p220_p9, %p217_p8 }
  0x1a   :  { %225 = shalt.err (!%p222_p10)
}
  0x1b   :  { %s226_s12 = scalar_lea.vmem %s32_s30, 384  ;;  %p231_p12 = scmp.lt.s32.totalorder %s32_s30, %s32_s30 }
  0x1c   :  { %p227_p11 = scmp.ne.s32.totalorder %s32_s30, %s226_s12  ;;  %p232_p13 = scmp.lt.s32.totalorder %s226_s12, %s226_s12 }
  0x1e   :  { %p233_p0 = por %p232_p13, %p231_p12 }
  0x20   :  { %p234_p1 = pnand %p233_p0, %p227_p11 }
  0x22   :  { %237 = shalt.err (!%p234_p1)
}
  0x23   :  { %37 = dma.hbm_to_vmem [thread:$0]  %s406_s1, 384, %s32_s30, [#allocation6], %s291_s25, %s291_s25, %s292_s26  }
  0x24   :  { %282 = dma.done.wait [#allocation3], 384  }
  0x25   :  { %283 = vsyncadd [#allocation3], 4294966912 }
  0x26   :  { %284 = dma.done.wait [#allocation6], 384  }
  0x27   :  { %285 = vsyncadd [#allocation6], 4294966912  ;;  %v46_v0 = vld [vmem:[#allocation2] sm:$0xff]  ;;  %v49_v1 = vld [vmem:[#allocation5] sm:$0xff]  ;;  %s295_s22 = smov [#allocation8]  }
  0x28   :  { %v178_v2 = vld [vmem:[%s407_s2] ss:$0 sm:$0xff]  ;;  %v179_v3 = vld [vmem:[%s407_s2 + $0x1] ss:$0 sm:$0xff]  ;;  %v47_v5 = vld [vmem:[#allocation2 + $0x8] sm:$0xff]  ;;  %s161_s23 = sshll.u32 %s295_s22, 4  ;;  %s162_s23 = int_to_ptr.vmem [resolvable:$true] %s161_s23 }
  0x29   :  { %v60_v4 = vmul.f32 %v178_v2, %v46_v0  ;;  %v83_v6 = vmul.f32 %v178_v2, %v49_v1  ;;  %v67_v7 = vmul.f32 %v179_v3, %v49_v1  ;;  %v50_v8 = vld [vmem:[#allocation5 + $0x8] sm:$0xff]  ;;  %v61_v9 = vmul.f32 %v178_v2, %v47_v5  ;;  %v48_v10 = vld [vmem:[#allocation2 + $0x10] sm:$0x3]  ;;  %v51_v11 = vld [vmem:[#allocation5 + $0x10] sm:$0x3] }
  0x2a   :  { %v86_v12 = vmul.f32 %v179_v3, %v46_v0  ;;  %v87_v13 = vmul.f32 %v179_v3, %v47_v5  ;;  %v180_v14 = vld [vmem:[%s407_s2 + $0x2] ss:$0 sm:$0xff]  ;;  %v68_v15 = vmul.f32 %v179_v3, %v50_v8  ;;  %v62_v16 = vmul.f32 %v178_v2, %v48_v10  ;;  %v181_v18 = vld [vmem:[%s407_s2 + $0x3] ss:$0 sm:$0xff]  ;;  %s294_s2 = smov [#allocation7]  }
  0x2b   :  { %v69_v17 = vmul.f32 %v179_v3, %v51_v11  ;;  %v84_v19 = vmul.f32 %v178_v2, %v50_v8  ;;  %v70_v20 = vsub.f32 %v60_v4, %v67_v7  ;;  %v85_v22 = vmul.f32 %v178_v2, %v51_v11  ;;  %s149_s21 = sshll.u32 %s294_s2, 4  ;;  %s363_s21 = int_to_ptr.vmem [resolvable:$true] %s149_s21 }
  0x2c   :  { %v89_v21 = vadd.f32 %v86_v12, %v83_v6  ;;  %v88_v23 = vmul.f32 %v179_v3, %v48_v10  ;;  %v71_v24 = vsub.f32 %v61_v9, %v68_v15  ;;  %s238_s24 = scalar_lea.vmem %s363_s21, 384  ;;  %p243_p3 = scmp.lt.s32.totalorder %s363_s21, %s363_s21 }
  0x2d   :  { %v72_v25 = vsub.f32 %v62_v16, %v69_v17  ;;  %v90_v26 = vadd.f32 %v87_v13, %v84_v19  ;;  %v77_v27 = vadd.f32 %v180_v14, %v70_v20  ;;  %p239_p2 = scmp.ne.s32.totalorder %s363_s21, %s238_s24  ;;  %p244_p4 = scmp.lt.s32.totalorder %s238_s24, %s238_s24 }
  0x2e   :  { %v96_v28 = vadd.f32 %v181_v18, %v89_v21  ;;  %v91_v29 = vadd.f32 %v88_v23, %v85_v22  ;;  %v78_v30 = vadd.f32 %v180_v14, %v71_v24 }
  0x2f   :  { %v79_v31 = vadd.f32 %v180_v14, %v72_v25  ;;  %v97_v32 = vadd.f32 %v181_v18, %v90_v26  ;;  %v80_v33 = vmax.f32 %v77_v27, 0.0  ;;  %p245_p5 = por %p244_p4, %p243_p3 }
  0x30   :  { %v99_v34 = vmax.f32 %v96_v28, 0.0  ;;  %v81_v35 = vmax.f32 %v78_v30, 0.0  ;;  %v98_v38 = vadd.f32 %v181_v18, %v91_v29 }
  0x31   :  { %v82_v36 = vmax.f32 %v79_v31, 0.0  ;;  %v100_v37 = vmax.f32 %v97_v32, 0.0  ;;  %vm102_vm0 = vcmp.gt.f32.partialorder %v80_v33, 0.01  ;;  %v182_v39 = vadd.f32 -0.01, %v80_v33  ;;  %p246_p6 = pnand %p245_p5, %p239_p2 }
  0x32   :  { %vm108_vm1 = vcmp.lt.f32.partialorder %v80_v33, -0.01  ;;  %v111_v40 = vadd.f32 0.01, %v80_v33  ;;  %vm103_vm2 = vcmp.gt.f32.partialorder %v81_v35, 0.01 }
  0x33   :  { %v183_v41 = vadd.f32 -0.01, %v81_v35  ;;  %vm109_vm3 = vcmp.lt.f32.partialorder %v81_v35, -0.01  ;;  %v112_v42 = vadd.f32 0.01, %v81_v35 }
  0x34   :  { %vm104_vm4 = vcmp.gt.f32.partialorder %v82_v36, 0.01  ;;  %v114_v43 = vsel %vm108_vm1, %v111_v40, 0.0  ;;  %v184_v44 = vadd.f32 -0.01, %v82_v36  ;;  %v101_v45 = vmax.f32 %v98_v38, 0.0 }
  0x35   :  { %vm110_vm5 = vcmp.lt.f32.partialorder %v82_v36, -0.01  ;;  %v117_v46 = vsel %vm102_vm0, %v182_v39, %v114_v43  ;;  %v115_v47 = vsel %vm109_vm3, %v112_v42, 0.0  ;;  %v113_v48 = vadd.f32 0.01, %v82_v36 }
  0x36   :  { %vm123_vm6 = vcmp.gt.f32.partialorder %v99_v34, 0.01  ;;  %120 = vst [vmem:[#allocation7] sm:$0xff] %v117_v46  ;;  %v118_v49 = vsel %vm103_vm2, %v183_v41, %v115_v47  ;;  %v185_v50 = vadd.f32 -0.01, %v99_v34 }
  0x37   :  { %vm129_vm7 = vcmp.lt.f32.partialorder %v99_v34, -0.01  ;;  %v132_v51 = vadd.f32 0.01, %v99_v34  ;;  %121 = vst [vmem:[#allocation7 + $0x8] sm:$0xff] %v118_v49  ;;  %v116_v52 = vsel %vm110_vm5, %v113_v48, 0.0 }
  0x38   :  { %vm124_vm8 = vcmp.gt.f32.partialorder %v100_v37, 0.01  ;;  %v186_v53 = vadd.f32 -0.01, %v100_v37  ;;  %v119_v54 = vsel %vm104_vm4, %v184_v44, %v116_v52  ;;  %vm130_vm9 = vcmp.lt.f32.partialorder %v100_v37, -0.01 }
  0x39   :  { %v135_v55 = vsel %vm129_vm7, %v132_v51, 0.0  ;;  %v133_v56 = vadd.f32 0.01, %v100_v37  ;;  %122 = vst [vmem:[#allocation7 + $0x10] sm:$0x3] %v119_v54 }
  0x3a   :  { %v138_v57 = vsel %vm123_vm6, %v185_v50, %v135_v55  ;;  %vm125_vm10 = vcmp.gt.f32.partialorder %v101_v45, 0.01  ;;  %v187_v58 = vadd.f32 -0.01, %v101_v45  ;;  %vm131_vm11 = vcmp.lt.f32.partialorder %v101_v45, -0.01 }
  0x3b   :  { %141 = vst [vmem:[#allocation8] sm:$0xff] %v138_v57  ;;  %v136_v59 = vsel %vm130_vm9, %v133_v56, 0.0  ;;  %v134_v60 = vadd.f32 0.01, %v101_v45 }
  0x3c   :  { %249 = shalt.err (!%p246_p6)
}
  0x3d   :  { %s250_s29 = scalar_lea.hbm %s408_s3, 384 }
  0x3e   :  { %p251_p7 = scmp.ne.s32.totalorder %s408_s3, %s250_s29  ;;  %p254_p8 = scmp.lt.u32.totalorder %s250_s29, %s408_s3 }
  0x40   :  { %p256_p9 = pnand %p254_p8, %p251_p7 }
  0x42   :  { %259 = shalt.err (!%p256_p9)
}
  0x43   :  { %155 = dma.vmem_to_hbm [thread:$0]  %s363_s21, 384, %s408_s3, [#allocation4], %s291_s25, %s291_s25, %s292_s26   ;;  %v139_v61 = vsel %vm124_vm8, %v186_v53, %v136_v59  ;;  %v137_v62 = vsel %vm131_vm11, %v134_v60, 0.0 }
  0x44   :  { %142 = vst [vmem:[#allocation8 + $0x8] sm:$0xff] %v139_v61  ;;  %v140_v63 = vsel %vm125_vm10, %v187_v58, %v137_v62  ;;  %s260_s10 = scalar_lea.vmem %s162_s23, 384  ;;  %p265_p11 = scmp.lt.s32.totalorder %s162_s23, %s162_s23 }
  0x45   :  { %143 = vst [vmem:[#allocation8 + $0x10] sm:$0x3] %v140_v63  ;;  %p261_p10 = scmp.ne.s32.totalorder %s162_s23, %s260_s10  ;;  %p266_p12 = scmp.lt.s32.totalorder %s260_s10, %s260_s10 }
  0x47   :  { %p267_p13 = por %p266_p12, %p265_p11 }
  0x49   :  { %p268_p0 = pnand %p267_p13, %p261_p10 }
  0x4b   :  { %271 = shalt.err (!%p268_p0)
}
  0x4c   :  { %s272_s3 = scalar_lea.hbm %s409_s4, 384 }
  0x4d   :  { %p273_p1 = scmp.ne.s32.totalorder %s409_s4, %s272_s3  ;;  %p276_p2 = scmp.lt.u32.totalorder %s272_s3, %s409_s4 }
  0x4f   :  { %p278_p3 = pnand %p276_p2, %p273_p1 }
  0x51   :  { %281 = shalt.err (!%p278_p3)
}
  0x52   :  { %167 = dma.vmem_to_hbm [thread:$0]  %s162_s23, 384, %s409_s4, [#allocation9], %s291_s25, %s291_s25, %s292_s26  }
  0x53   :  { %286 = dma.done.wait [#allocation4], 384  }
  0x54   :  { %287 = vsyncadd [#allocation4], 4294966912 }
  0x55   :  { %288 = dma.done.wait [#allocation9], 384  }
  0x56   :  { %289 = vsyncadd [#allocation9], 4294966912 }
  0x57   :  { %174 = vsyncpa [#allocation3], 1 }
  0x58   :  { %175 = vsyncpa [#allocation6], 1 }
  0x59   :  { %176 = vsyncpa [#allocation4], 1 }
  0x5a   :  { %177 = vsyncpa [#allocation9], 1 }

</bundles_post_ra>
